<compile_context>
chip_gen: v7x
topology: tpu7x:2x2x1
jax: 0.10.0
libtpu: 0.0.40
codegen_flags: <defaults>
</compile_context>

<pallas_src>
import functools
import math

import numpy as np
import jax
import jax.numpy as jnp
from jax.experimental import pallas as pl
from jax.experimental.pallas import tpu as pltpu  # noqa: F401  (kept per template)


HW = 16  # 4 x 4 foreword resolution (fixed by the module)


# ----------------------------------------------------------------------------
# Fused Pallas kernel (single invocation, no grid)
# ----------------------------------------------------------------------------

def _foreword_kernel(x_ref, mod1_ref, mod2_ref, skip_ref,
                     fc_w_ref, fc_b_ref,
                     a1_w_ref, a1_b_ref, a2_w_ref, a2_b_ref,
                     w2_ref, expand_ref, mconv_ref, mrgb_ref, brgb_ref,
                     x_out_ref, img_out_ref):
    sqrt2 = math.sqrt(2.0)

    # --- fc (lrelu FC, gain pre-folded into fc_w/fc_b) + skip add -----------
    y = jnp.dot(x_ref[...], fc_w_ref[...], preferred_element_type=jnp.float32)
    y = y + fc_b_ref[...]
    y = jnp.where(y >= 0.0, y, 0.2 * y) * sqrt2
    y = y + skip_ref[...]                                        # [B, Cin*HW]

    # --- style affine layers -------------------------------------------------
    s1 = jnp.dot(mod1_ref[...], a1_w_ref[...],
                 preferred_element_type=jnp.float32) + a1_b_ref[...]   # [B, Cin]
    s2 = jnp.dot(mod2_ref[...], a2_w_ref[...],
                 preferred_element_type=jnp.float32) + a2_b_ref[...]   # [B, Cin]

    # --- demodulation coefficients  d[b, cout] -------------------------------
    ssq = jnp.dot(s1 * s1, w2_ref[...], preferred_element_type=jnp.float32)
    d = jax.lax.rsqrt(ssq + 1e-8)                                # [B, Cout]

    # --- expand per-channel vectors onto the (channel, position) lane axis ---
    ex = expand_ref[...]                                         # [Cin, Cin*HW]
    s1rep = jnp.dot(s1, ex, preferred_element_type=jnp.float32)  # [B, Cin*HW]
    s2rep = jnp.dot(s2, ex, preferred_element_type=jnp.float32)  # [B, Cin*HW]
    drep = jnp.dot(d, ex, preferred_element_type=jnp.float32)    # [B, Cout*HW]

    # --- modulated 3x3 conv: input-mod -> one dense matmul -> demod -> lrelu -
    conv = jnp.dot(y * s1rep, mconv_ref[...],
                   preferred_element_type=jnp.float32) * drep    # [B, Cout*HW]
    conv = jnp.where(conv >= 0.0, conv, 0.2 * conv) * sqrt2
    x_out_ref[...] = conv

    # --- ToRGB: modulated 1x1 conv (no demod) + bias --------------------------
    img = jnp.dot(conv * s2rep, mrgb_ref[...],
                  preferred_element_type=jnp.float32) + brgb_ref[...]
    img_out_ref[...] = img


# ----------------------------------------------------------------------------
# Parameters (deterministic, matching the PyTorch __init__ shapes)
# ----------------------------------------------------------------------------

def init_params(key, z_dim, in_channels, img_channels):
    zh = z_dim // 2
    w_dim = zh * 3
    fc_out = zh * 4 * 4
    ks = jax.random.split(key, 5)
    return dict(
        fc_w=jax.random.normal(ks[0], (fc_out, z_dim), jnp.float32),
        fc_b=jnp.zeros((fc_out,), jnp.float32),
        conv_affine_w=jax.random.normal(ks[1], (in_channels, w_dim), jnp.float32),
        conv_affine_b=jnp.ones((in_channels,), jnp.float32),         # bias_init=1
        conv_weight=jax.random.normal(ks[2], (in_channels, in_channels, 3, 3),
                                      jnp.float32),
        rgb_affine_w=jax.random.normal(ks[3], (in_channels, w_dim), jnp.float32),
        rgb_affine_b=jnp.ones((in_channels,), jnp.float32),          # bias_init=1
        rgb_weight=jax.random.normal(ks[4], (img_channels, in_channels, 1, 1),
                                     jnp.float32),
        rgb_bias=jnp.zeros((img_channels,), jnp.float32),
    )


# ----------------------------------------------------------------------------
# Wrapper: parameter preprocessing + single pallas_call
# ----------------------------------------------------------------------------

def _conv_tap_indicator():
    """T[q, p, kh, kw] = 1 iff input position q feeds tap (kh, kw) of output p
    for a 3x3 / padding-1 correlation on a 4x4 image (torch conv2d semantics)."""
    T = np.zeros((HW, HW, 3, 3), np.float32)
    for i in range(4):
        for j in range(4):
            p = i * 4 + j
            for kh in range(3):
                for kw in range(3):
                    qi, qj = i + kh - 1, j + kw - 1
                    if 0 <= qi < 4 and 0 <= qj < 4:
                        T[qi * 4 + qj, p, kh, kw] = 1.0
    return T


def synthesis_foreword(params, x, ws, feats4, *, z_dim, in_channels, img_channels):
    B = x.shape[0]
    zh = z_dim // 2
    assert in_channels == zh, "forward only valid when in_channels == z_dim // 2"
    w_dim = zh * 3
    fc_out = zh * HW
    Cin = in_channels
    Cout = in_channels
    f32 = jnp.float32

    # ---- parameter preprocessing (gains folded in; constants under jit) -----
    fc_wt = params['fc_w'].T * (1.0 / math.sqrt(z_dim))            # [z_dim, fc_out]
    fc_b = params['fc_b'].reshape(1, fc_out)
    a1_wt = params['conv_affine_w'].T * (1.0 / math.sqrt(w_dim))   # [w_dim, Cin]
    a1_b = params['conv_affine_b'].reshape(1, Cin)
    rgb_gain = 1.0 / math.sqrt(Cin)                                 # ToRGB weight_gain
    a2_wt = params['rgb_affine_w'].T * (1.0 / math.sqrt(w_dim)) * rgb_gain
    a2_b = params['rgb_affine_b'].reshape(1, Cin) * rgb_gain

    w = params['conv_weight']                                       # [Cout, Cin, 3, 3]
    w2t = jnp.sum(w * w, axis=(2, 3)).T                             # [Cin, Cout]

    # Dense conv matrix [Cin*HW, Cout*HW]: Mconv[(c,q),(o,p)] = w[o,c,kh,kw] for
    # the tap linking input position q to output position p (0 otherwise).
    taps = jnp.asarray(_conv_tap_indicator())
    mconv = jnp.einsum('qpkl,ockl->cqop', taps, w).reshape(Cin * HW, Cout * HW)

    # ToRGB 1x1 conv as a [Cout*HW, img_ch*HW] map (identity over positions).
    w_rgb = params['rgb_weight'].reshape(img_channels, Cin)
    mrgb = jnp.einsum('rc,qp->cqrp', w_rgb,
                      jnp.eye(HW, dtype=f32)).reshape(Cout * HW, img_channels * HW)
    brgb = jnp.repeat(params['rgb_bias'], HW).reshape(1, img_channels * HW)

    # channel -> (channel, position) expansion matrix (0/1 constant).
    expand = jnp.asarray(np.kron(np.eye(Cin, dtype=np.float32),
                                 np.ones((1, HW), np.float32)))     # [Cin, Cin*HW]

    # ---- runtime inputs ------------------------------------------------------
    mod1 = jnp.concatenate([ws[:, 0], x], axis=1)                   # [B, w_dim]
    mod2 = jnp.concatenate([ws[:, 2 * 2 - 3], x], axis=1)           # ws[:, 1]
    skip = feats4.reshape(B, fc_out)                                # [B, Cin*HW]

    x_flat, img_flat = pl.pallas_call(
        _foreword_kernel,
        out_shape=(jax.ShapeDtypeStruct((B, Cout * HW), f32),
                   jax.ShapeDtypeStruct((B, img_channels * HW), f32)),
    )(x, mod1, mod2, skip, fc_wt, fc_b, a1_wt, a1_b, a2_wt, a2_b,
      w2t, expand, mconv, mrgb, brgb)

    x_out = x_flat.reshape(B, Cout, 4, 4)
    img_out = img_flat.reshape(B, img_channels, 4, 4)
    return x_out, img_out


# ----------------------------------------------------------------------------
# Pure-JAX reference (correctness sanity check)
# ----------------------------------------------------------------------------

def reference_forward(params, x, ws, feats4, *, z_dim, in_channels, img_channels):
    B = x.shape[0]
    zh = z_dim // 2
    w_dim = zh * 3
    y = x @ (params['fc_w'].T / math.sqrt(z_dim)) + params['fc_b'][None]
    y = jnp.where(y >= 0, y, 0.2 * y) * math.sqrt(2.0)
    xf = y.reshape(B, zh, 4, 4) + feats4

    mod1 = jnp.concatenate([ws[:, 0], x], axis=1)
    s1 = mod1 @ (params['conv_affine_w'].T / math.sqrt(w_dim)) + params['conv_affine_b'][None]
    w = params['conv_weight'][None] * s1[:, None, :, None, None]
    d = jax.lax.rsqrt(jnp.sum(w * w, axis=(2, 3, 4)) + 1e-8)
    w = w * d[:, :, None, None, None]
    conv = jax.vmap(lambda xi, wi: jax.lax.conv_general_dilated(
        xi[None], wi, (1, 1), ((1, 1), (1, 1)),
        dimension_numbers=('NCHW', 'OIHW', 'NCHW'))[0])(xf, w)
    conv = jnp.where(conv >= 0, conv, 0.2 * conv) * math.sqrt(2.0)

    mod2 = jnp.concatenate([ws[:, 1], x], axis=1)
    s2 = (mod2 @ (params['rgb_affine_w'].T / math.sqrt(w_dim))
          + params['rgb_affine_b'][None]) / math.sqrt(in_channels)
    w1 = params['rgb_weight'][:, :, 0, 0][None] * s2[:, None, :]
    img = jnp.einsum('boi,bihw->bohw', w1, conv) + params['rgb_bias'][None, :, None, None]
    return conv, img


# ----------------------------------------------------------------------------

if __name__ == "__main__":
    B = 2
    z_dim = 16
    in_channels = z_dim // 2        # 8 (required for the forward to type-check)
    img_channels = 3

    key = jax.random.PRNGKey(0)
    kp, kx, kw, kf = jax.random.split(key, 4)

    params = init_params(kp, z_dim, in_channels, img_channels)
    x = jax.random.normal(kx, (B, z_dim), jnp.float32)
    ws = jax.random.normal(kw, (B, 2, z_dim // 2), jnp.float32)
    feats4 = jax.random.normal(kf, (B, in_channels, 4, 4), jnp.float32)
    # The `img` input of the PyTorch forward is unused (overwritten by ToRGB).

    fwd = jax.jit(functools.partial(
        synthesis_foreword, z_dim=z_dim, in_channels=in_channels,
        img_channels=img_channels))
    x_out, img_out = fwd(params, x, ws, feats4)
    jax.block_until_ready((x_out, img_out))

    x_ref, img_ref = reference_forward(
        params, x, ws, feats4,
        z_dim=z_dim, in_channels=in_channels, img_channels=img_channels)
    jax.block_until_ready((x_ref, img_ref))

    assert x_out.shape == (B, in_channels, 4, 4)
    assert img_out.shape == (B, img_channels, 4, 4)
    assert jnp.allclose(x_out, x_ref, atol=2e-4, rtol=2e-4), "feature mismatch"
    assert jnp.allclose(img_out, img_ref, atol=2e-4, rtol=2e-4), "img mismatch"

    print("KERNEL_OK")
</pallas_src>

<mosaic_0001>
module attributes {stable_mosaic.version = 11 : i64} {
  func.func @_foreword_kernel(%arg0: memref<2x16xf32, #tpu.memory_space<vmem>>, %arg1: memref<2x24xf32, #tpu.memory_space<vmem>>, %arg2: memref<2x24xf32, #tpu.memory_space<vmem>>, %arg3: memref<2x128xf32, #tpu.memory_space<vmem>>, %arg4: memref<16x128xf32, #tpu.memory_space<vmem>>, %arg5: memref<1x128xf32, #tpu.memory_space<vmem>>, %arg6: memref<24x8xf32, #tpu.memory_space<vmem>>, %arg7: memref<1x8xf32, #tpu.memory_space<vmem>>, %arg8: memref<24x8xf32, #tpu.memory_space<vmem>>, %arg9: memref<1x8xf32, #tpu.memory_space<vmem>>, %arg10: memref<8x8xf32, #tpu.memory_space<vmem>>, %arg11: memref<8x128xf32, #tpu.memory_space<vmem>>, %arg12: memref<128x128xf32, #tpu.memory_space<vmem>>, %arg13: memref<128x48xf32, #tpu.memory_space<vmem>>, %arg14: memref<1x48xf32, #tpu.memory_space<vmem>>, %arg15: memref<2x128xf32, #tpu.memory_space<vmem>>, %arg16: memref<2x48xf32, #tpu.memory_space<vmem>>) attributes {dimension_semantics = [], scalar_prefetch = 0 : i64, scratch_operands = 0 : i64, tpu.core_type = #tpu.core_type<tc>} {
    %c0 = arith.constant 0 : index
    %c0_0 = arith.constant 0 : index
    %0 = vector.load %arg0[%c0, %c0_0] : memref<2x16xf32, #tpu.memory_space<vmem>>, vector<2x16xf32>
    %c0_1 = arith.constant 0 : index
    %c0_2 = arith.constant 0 : index
    %1 = vector.load %arg4[%c0_1, %c0_2] : memref<16x128xf32, #tpu.memory_space<vmem>>, vector<16x128xf32>
    %cst = arith.constant dense<0.000000e+00> : vector<2x128xf32>
    %2 = tpu.matmul %0, %1, %cst {dimension_numbers = #tpu.dot_dimension_numbers<[1], [0], [0], [1], [0, 0, 1, 1], [], []>} : vector<2x16xf32>, vector<16x128xf32>, vector<2x128xf32> -> vector<2x128xf32>
    %c0_3 = arith.constant 0 : index
    %c0_4 = arith.constant 0 : index
    %3 = vector.load %arg5[%c0_3, %c0_4] : memref<1x128xf32, #tpu.memory_space<vmem>>, vector<1x128xf32>
    %4 = vector.broadcast %3 : vector<1x128xf32> to vector<2x128xf32>
    %5 = arith.addf %2, %4 : vector<2x128xf32>
    %cst_5 = arith.constant 0.000000e+00 : f32
    %6 = vector.broadcast %cst_5 : f32 to vector<2x128xf32>
    %7 = arith.cmpf oge, %5, %6 : vector<2x128xf32>
    %cst_6 = arith.constant 2.000000e-01 : f32
    %8 = vector.broadcast %cst_6 : f32 to vector<2x128xf32>
    %9 = arith.mulf %8, %5 : vector<2x128xf32>
    %10 = arith.select %7, %5, %9 : vector<2x128xi1>, vector<2x128xf32>
    %cst_7 = arith.constant 1.41421354 : f32
    %11 = vector.broadcast %cst_7 : f32 to vector<2x128xf32>
    %12 = arith.mulf %10, %11 : vector<2x128xf32>
    %c0_8 = arith.constant 0 : index
    %c0_9 = arith.constant 0 : index
    %13 = vector.load %arg3[%c0_8, %c0_9] : memref<2x128xf32, #tpu.memory_space<vmem>>, vector<2x128xf32>
    %14 = arith.addf %12, %13 : vector<2x128xf32>
    %c0_10 = arith.constant 0 : index
    %c0_11 = arith.constant 0 : index
    %15 = vector.load %arg1[%c0_10, %c0_11] : memref<2x24xf32, #tpu.memory_space<vmem>>, vector<2x24xf32>
    %c0_12 = arith.constant 0 : index
    %c0_13 = arith.constant 0 : index
    %16 = vector.load %arg6[%c0_12, %c0_13] : memref<24x8xf32, #tpu.memory_space<vmem>>, vector<24x8xf32>
    %cst_14 = arith.constant dense<0.000000e+00> : vector<2x8xf32>
    %17 = tpu.matmul %15, %16, %cst_14 {dimension_numbers = #tpu.dot_dimension_numbers<[1], [0], [0], [1], [0, 0, 1, 1], [], []>} : vector<2x24xf32>, vector<24x8xf32>, vector<2x8xf32> -> vector<2x8xf32>
    %c0_15 = arith.constant 0 : index
    %c0_16 = arith.constant 0 : index
    %18 = vector.load %arg7[%c0_15, %c0_16] : memref<1x8xf32, #tpu.memory_space<vmem>>, vector<1x8xf32>
    %19 = vector.broadcast %18 : vector<1x8xf32> to vector<2x8xf32>
    %20 = arith.addf %17, %19 : vector<2x8xf32>
    %c0_17 = arith.constant 0 : index
    %c0_18 = arith.constant 0 : index
    %21 = vector.load %arg2[%c0_17, %c0_18] : memref<2x24xf32, #tpu.memory_space<vmem>>, vector<2x24xf32>
    %c0_19 = arith.constant 0 : index
    %c0_20 = arith.constant 0 : index
    %22 = vector.load %arg8[%c0_19, %c0_20] : memref<24x8xf32, #tpu.memory_space<vmem>>, vector<24x8xf32>
    %cst_21 = arith.constant dense<0.000000e+00> : vector<2x8xf32>
    %23 = tpu.matmul %21, %22, %cst_21 {dimension_numbers = #tpu.dot_dimension_numbers<[1], [0], [0], [1], [0, 0, 1, 1], [], []>} : vector<2x24xf32>, vector<24x8xf32>, vector<2x8xf32> -> vector<2x8xf32>
    %c0_22 = arith.constant 0 : index
    %c0_23 = arith.constant 0 : index
    %24 = vector.load %arg9[%c0_22, %c0_23] : memref<1x8xf32, #tpu.memory_space<vmem>>, vector<1x8xf32>
    %25 = vector.broadcast %24 : vector<1x8xf32> to vector<2x8xf32>
    %26 = arith.addf %23, %25 : vector<2x8xf32>
    %27 = arith.mulf %20, %20 : vector<2x8xf32>
    %c0_24 = arith.constant 0 : index
    %c0_25 = arith.constant 0 : index
    %28 = vector.load %arg10[%c0_24, %c0_25] : memref<8x8xf32, #tpu.memory_space<vmem>>, vector<8x8xf32>
    %cst_26 = arith.constant dense<0.000000e+00> : vector<2x8xf32>
    %29 = tpu.matmul %27, %28, %cst_26 {dimension_numbers = #tpu.dot_dimension_numbers<[1], [0], [0], [1], [0, 0, 1, 1], [], []>} : vector<2x8xf32>, vector<8x8xf32>, vector<2x8xf32> -> vector<2x8xf32>
    %cst_27 = arith.constant 9.99999993E-9 : f32
    %30 = vector.broadcast %cst_27 : f32 to vector<2x8xf32>
    %31 = arith.addf %29, %30 : vector<2x8xf32>
    %32 = math.rsqrt %31 : vector<2x8xf32>
    %c0_28 = arith.constant 0 : index
    %c0_29 = arith.constant 0 : index
    %33 = vector.load %arg11[%c0_28, %c0_29] : memref<8x128xf32, #tpu.memory_space<vmem>>, vector<8x128xf32>
    %cst_30 = arith.constant dense<0.000000e+00> : vector<2x128xf32>
    %34 = tpu.matmul %20, %33, %cst_30 {dimension_numbers = #tpu.dot_dimension_numbers<[1], [0], [0], [1], [0, 0, 1, 1], [], []>} : vector<2x8xf32>, vector<8x128xf32>, vector<2x128xf32> -> vector<2x128xf32>
    %cst_31 = arith.constant dense<0.000000e+00> : vector<2x128xf32>
    %35 = tpu.matmul %26, %33, %cst_31 {dimension_numbers = #tpu.dot_dimension_numbers<[1], [0], [0], [1], [0, 0, 1, 1], [], []>} : vector<2x8xf32>, vector<8x128xf32>, vector<2x128xf32> -> vector<2x128xf32>
    %cst_32 = arith.constant dense<0.000000e+00> : vector<2x128xf32>
    %36 = tpu.matmul %32, %33, %cst_32 {dimension_numbers = #tpu.dot_dimension_numbers<[1], [0], [0], [1], [0, 0, 1, 1], [], []>} : vector<2x8xf32>, vector<8x128xf32>, vector<2x128xf32> -> vector<2x128xf32>
    %37 = arith.mulf %14, %34 : vector<2x128xf32>
    %c0_33 = arith.constant 0 : index
    %c0_34 = arith.constant 0 : index
    %38 = vector.load %arg12[%c0_33, %c0_34] : memref<128x128xf32, #tpu.memory_space<vmem>>, vector<128x128xf32>
    %cst_35 = arith.constant dense<0.000000e+00> : vector<2x128xf32>
    %39 = tpu.matmul %37, %38, %cst_35 {dimension_numbers = #tpu.dot_dimension_numbers<[1], [0], [0], [1], [0, 0, 1, 1], [], []>} : vector<2x128xf32>, vector<128x128xf32>, vector<2x128xf32> -> vector<2x128xf32>
    %40 = arith.mulf %39, %36 : vector<2x128xf32>
    %cst_36 = arith.constant 0.000000e+00 : f32
    %41 = vector.broadcast %cst_36 : f32 to vector<2x128xf32>
    %42 = arith.cmpf oge, %40, %41 : vector<2x128xf32>
    %cst_37 = arith.constant 2.000000e-01 : f32
    %43 = vector.broadcast %cst_37 : f32 to vector<2x128xf32>
    %44 = arith.mulf %43, %40 : vector<2x128xf32>
    %45 = arith.select %42, %40, %44 : vector<2x128xi1>, vector<2x128xf32>
    %cst_38 = arith.constant 1.41421354 : f32
    %46 = vector.broadcast %cst_38 : f32 to vector<2x128xf32>
    %47 = arith.mulf %45, %46 : vector<2x128xf32>
    %c0_39 = arith.constant 0 : index
    %c0_40 = arith.constant 0 : index
    %48 = vector.load %arg15[%c0_39, %c0_40] : memref<2x128xf32, #tpu.memory_space<vmem>>, vector<2x128xf32>
    tpu.vector_store %arg15[%c0_39, %c0_40], %47 {strides = array<i32>} : memref<2x128xf32, #tpu.memory_space<vmem>>, vector<2x128xf32>,
    %49 = arith.mulf %47, %35 : vector<2x128xf32>
    %c0_41 = arith.constant 0 : index
    %c0_42 = arith.constant 0 : index
    %50 = vector.load %arg13[%c0_41, %c0_42] : memref<128x48xf32, #tpu.memory_space<vmem>>, vector<128x48xf32>
    %cst_43 = arith.constant dense<0.000000e+00> : vector<2x48xf32>
    %51 = tpu.matmul %49, %50, %cst_43 {dimension_numbers = #tpu.dot_dimension_numbers<[1], [0], [0], [1], [0, 0, 1, 1], [], []>} : vector<2x128xf32>, vector<128x48xf32>, vector<2x48xf32> -> vector<2x48xf32>
    %c0_44 = arith.constant 0 : index
    %c0_45 = arith.constant 0 : index
    %52 = vector.load %arg14[%c0_44, %c0_45] : memref<1x48xf32, #tpu.memory_space<vmem>>, vector<1x48xf32>
    %53 = vector.broadcast %52 : vector<1x48xf32> to vector<2x48xf32>
    %54 = arith.addf %51, %53 : vector<2x48xf32>
    %c0_46 = arith.constant 0 : index
    %c0_47 = arith.constant 0 : index
    %55 = vector.load %arg16[%c0_46, %c0_47] : memref<2x48xf32, #tpu.memory_space<vmem>>, vector<2x48xf32>
    tpu.vector_store %arg16[%c0_46, %c0_47], %54 {strides = array<i32>} : memref<2x48xf32, #tpu.memory_space<vmem>>, vector<2x48xf32>,
    return
  }
}

</mosaic_0001>

<bundles_post_ra>
// kernel: synthesis_foreword.1
= control target key start
LH: loop header
LB: loop body
LE: loop exit
PB: predicated region body
PF: predicated region fallthrough
CT: control target
= control target key end

     0   :  { %v1046_v0 = vmov 0.0|0.0   ;;  %vm1047_vm0 = vmmov 0   ;;  %v1048_v3 = vmov 0.0   ;;  %vm62_vm1 = vcmask 130048   ;;  %s1340_s6 = inlined_call_operand.vmem [shape: f32[24,8], index: 6, kind: input, shape index: {}]   ;;  %s1341_s4 = inlined_call_operand.vmem [shape: f32[16,128], index: 4, kind: input, shape index: {}]   ;;  %s1342_s8 = inlined_call_operand.vmem [shape: f32[24,8], index: 8, kind: input, shape index: {}]   ;;  %s1343_s0 = inlined_call_operand.vmem [shape: f32[2,16], index: 0, kind: input, shape index: {}]   ;;  %s1344_s1 = inlined_call_operand.vmem [shape: f32[2,24], index: 1, kind: input, shape index: {}]   ;;  %s1345_s2 = inlined_call_operand.vmem [shape: f32[2,24], index: 2, kind: input, shape index: {}]   ;;  %s1346_s11 = inlined_call_operand.vmem [shape: f32[8,128], index: 11, kind: input, shape index: {}]   ;;  %s1347_s10 = inlined_call_operand.vmem [shape: f32[8,8], index: 10, kind: input, shape index: {}]   ;;  %s1348_s7 = inlined_call_operand.vmem [shape: f32[1,8], index: 7, kind: input, shape index: {}]   ;;  %s1349_s9 = inlined_call_operand.vmem [shape: f32[1,8], index: 9, kind: input, shape index: {}]   ;;  %s1350_s12 = inlined_call_operand.vmem [shape: f32[128,128], index: 12, kind: input, shape index: {}]   ;;  %s1351_s5 = inlined_call_operand.vmem [shape: f32[1,128], index: 5, kind: input, shape index: {}]   ;;  %s1352_s3 = inlined_call_operand.vmem [shape: f32[2,128], index: 3, kind: input, shape index: {}]   ;;  %s1353_s13 = inlined_call_operand.vmem [shape: f32[128,48], index: 13, kind: input, shape index: {}]   ;;  %s1354_s15 = inlined_call_operand.vmem [shape: f32[2,128], index: 15, kind: output, shape index: {0}]   ;;  %s1355_s14 = inlined_call_operand.vmem [shape: f32[1,48], index: 14, kind: input, shape index: {}]   ;;  %s1356_s16 = inlined_call_operand.vmem [shape: f32[2,48], index: 16, kind: output, shape index: {1}]  }
   0x1   :  { %1358 = sst [smem:[#allocation2_spill]] %s1340_s6  ;;  %987 = vmatprep.subr.bf16.mxu1 %v1046_v0  ;;  %882 = vmatprep.mubr.msk.f32.mxu1 %vm1047_vm0, %v1048_v3  ;;  %v53_v5 = vld [vmem:[%s1341_s4] sm:$0xff]  ;;  %v54_v6 = vld [vmem:[%s1341_s4 + $0x8] sm:$0xff]  ;;  %vm153_vm2 = vcmask 195584   ;;  %v230_v14 = vld [vmem:[%s1342_s8 + $0x10] sm:$0xff]  ;;  %vm313_vm3 = vcmask 64512  }
   0x2   :  { %s1359_s23 = sld [smem:[#allocation2_spill]]  ;;  %984 = vmatprep.subr.bf16.mxu0 %v1046_v0  ;;  %873 = vmatprep.mubr.msk.f32.mxu0 %vm1047_vm0, %v1048_v3  ;;  %v985_v7 = vpack.c.bf16 %v54_v6, %v53_v5  ;;  %v228_v8 = vld [vmem:[%s1342_s8] sm:$0xff]  ;;  %v229_v9 = vld [vmem:[%s1342_s8 + $0x8] sm:$0xff]  ;;  %v611_v32 = vld [vmem:[%s1350_s12 + $0x10] sm:$0xff]  ;;  %vm795_vm6 = vcmask 386048  }
   0x3   :  { %v52_v11 = vld [vmem:[%s1343_s0] sm:$0x3]  ;;  %v991_v12 = vpack.c.bf16 %v229_v9, %v228_v8  ;;  %v610_v27 = vld [vmem:[%s1350_s12 + $0x8] sm:$0xff]  ;;  %v612_v33 = vld [vmem:[%s1350_s12 + $0x18] sm:$0xff] }
   0x4   :  { %986 = vmatpush3.bf16.msra.mxu0 %v985_v7  ;;  %v142_v13 = vld [vmem:[%s1344_s1] sm:$0x3]  ;;  %v997_v34 = vpack.c.bf16 %v612_v33, %v611_v32  ;;  %v614_v36 = vld [vmem:[%s1350_s12 + $0x28] sm:$0xff]  ;;  %v615_v38 = vld [vmem:[%s1350_s12 + $0x30] sm:$0xff] }
   0x5   :  { %990 = vmatprep.subr.bf16.mxu0 %v1046_v0  ;;  %v227_v15 = vld [vmem:[%s1345_s2] sm:$0x3]  ;;  %v616_v39 = vld [vmem:[%s1350_s12 + $0x38] sm:$0xff]  ;;  %v618_v42 = vld [vmem:[%s1350_s12 + $0x48] sm:$0xff] }
   0x6   :  { %v388_v16 = vld [vmem:[%s1346_s11] sm:$0xff]  ;;  %v1003_v40 = vpack.c.bf16 %v616_v39, %v615_v38  ;;  %v619_v44 = vld [vmem:[%s1350_s12 + $0x50] sm:$0xff]  ;;  %v620_v45 = vld [vmem:[%s1350_s12 + $0x58] sm:$0xff] }
   0x7   :  { %874 = vmatmul.mubr.msk.f32.vlgmr.msra.gmra.mrb[0].mxu0 %vm62_vm1, %v52_v11  ;;  %v312_v17 = vld [vmem:[%s1347_s10] sm:$0xff]  ;;  %v1009_v46 = vpack.c.bf16 %v620_v45, %v619_v44  ;;  %v622_v48 = vld [vmem:[%s1350_s12 + $0x68] sm:$0xff]  ;;  %v623_v50 = vld [vmem:[%s1350_s12 + $0x70] sm:$0xff] }
   0x8   :  { %v143_v1 = vld [vmem:[%s1359_s23] sm:$0xff]  ;;  %v144_v2 = vld [vmem:[%s1359_s23 + $0x8] sm:$0xff]  ;;  %v145_v10 = vld [vmem:[%s1359_s23 + $0x10] sm:$0xff]  ;;  %992 = vmatpush3.bf16.msra.mxu0 %v991_v12  ;;  %891 = vmatprep.mubr.msk.f32.mxu0 %vm1047_vm0, %v1048_v3 }
   0x9   :  { %v988_v4 = vpack.c.bf16 %v144_v2, %v143_v1  ;;  %889 = vmatprep.subr.mxu0 %v1048_v3  ;;  %v807_v18 = vld [vmem:[%s1348_s7] ss:$0 sm:$0xff]  ;;  %v624_v51 = vld [vmem:[%s1350_s12 + $0x78] sm:$0xff]  ;;  %v703_v7 = vld [vmem:[%s1353_s13 + $0x8] sm:$0xff] }
   0xa   :  { %v809_v25 = vld [vmem:[%s1349_s9] ss:$0 sm:$0xff]  ;;  %v1015_v52 = vpack.c.bf16 %v624_v51, %v623_v50  ;;  %v704_v9 = vld [vmem:[%s1353_s13 + $0x10] sm:$0xff] }
   0xb   :  { %989 = vmatpush3.bf16.msra.mxu1 %v988_v4  ;;  %v609_v26 = vld [vmem:[%s1350_s12] sm:$0xff] }
   0xc   :  { %880 = vmatprep.subr.mxu1 %v1048_v3  ;;  %890 = vmatpush3.msra.mxu0 %v230_v14  ;;  %v994_v30 = vpack.c.bf16 %v610_v27, %v609_v26  ;;  %v613_v35 = vld [vmem:[%s1350_s12 + $0x20] sm:$0xff]  ;;  %v707_v14 = vld [vmem:[%s1353_s13 + $0x28] sm:$0xff]  ;;  %v716_v27 = vld [vmem:[%s1353_s13 + $0x70] sm:$0xff] }
   0xd   :  { %892 = vmatmul.mubr.msk.f32.vlgmr.msra.gmra.mrb[2].mxu0 %vm153_vm2, %v227_v15  ;;  %899 = vmatprep.subr.mxu0 %v1048_v3  ;;  %v1000_v37 = vpack.c.bf16 %v614_v36, %v613_v35  ;;  %v617_v41 = vld [vmem:[%s1350_s12 + $0x40] sm:$0xff] }
   0xe   :  { %901 = vmatprep.mubr.msk.f32.mxu0 %vm1047_vm0, %v1048_v3  ;;  %900 = vmatpush3.msra.mxu0 %v388_v16  ;;  %v1006_v43 = vpack.c.bf16 %v618_v42, %v617_v41  ;;  %v621_v47 = vld [vmem:[%s1350_s12 + $0x60] sm:$0xff] }
   0xf   :  { %881 = vmatpush3.msra.mxu1 %v145_v10  ;;  %909 = vmatprep.subr.mxu0 %v1048_v3  ;;  %v1012_v49 = vpack.c.bf16 %v622_v48, %v621_v47  ;;  %v805_v53 = vld [vmem:[%s1351_s5] ss:$0 sm:$0xff]  ;;  %v705_v10 = vld [vmem:[%s1353_s13 + $0x18] sm:$0xff] }
  0x10   :  { %883 = vmatmul.mubr.msk.f32.vlgmr.msra.gmra.mrb[0].mxu1 %vm153_vm2, %v142_v13  ;;  %894 = vmatprep.subr.mxu1 %v1048_v3  ;;  %v140_v58 = vld [vmem:[%s1352_s3] sm:$0x3]  ;;  %v1021_v12 = vpack.c.bf16 %v705_v10, %v704_v9 }
  0x11   :  { %896 = vmatprep.mubr.msk.f32.mxu1 %vm1047_vm0, %v1048_v3  ;;  %895 = vmatpush3.msra.mxu1 %v312_v17  ;;  %v702_v6 = vld [vmem:[%s1353_s13] sm:$0xff] }
  0x12   :  { %904 = vmatprep.subr.mxu1 %v1048_v3  ;;  %v1018_v8 = vpack.c.bf16 %v703_v7, %v702_v6  ;;  %v706_v13 = vld [vmem:[%s1353_s13 + $0x20] sm:$0xff] }
  0x13   :  { %v1024_v15 = vpack.c.bf16 %v707_v14, %v706_v13  ;;  %v710_v17 = vld [vmem:[%s1353_s13 + $0x40] sm:$0xff] }
  0x14   :  { %v815_v38 = vld [vmem:[%s1355_s14] ss:$0 sm:$0xff] }
  0xda   :  { %v1195_v19 = vpop.f32.mrb[0].mxu0 }
  0xdb   :  { %v875_v21 = vpop.f32.mrb[1].mxu0  ;;  %v133_v54 = vadd.f32 %v805_v53, %v1195_v19  ;;  %v711_v19 = vld [vmem:[%s1353_s13 + $0x48] sm:$0xff] }
  0xdc   :  { %v712_v21 = vld [vmem:[%s1353_s13 + $0x50] sm:$0xff] }
  0xdd   :  { %v137_v55 = vmul.f32 0.2, %v133_v54  ;;  %vm136_vm4 = vcmp.ge.f32.partialorder %v133_v54, 0.0 }
  0xdf   :  { %v138_v56 = vsel %vm136_vm4, %v133_v54, %v137_v55 }
  0xe0   :  { %v307_v28 = vpop.f32.mrb[2].mxu0  ;;  %v139_v57 = vmul.f32 1.4142135, %v138_v56 }
  0xe1   :  { %v308_v29 = vadd.f32 %v809_v25, %v307_v28  ;;  %v893_v31 = vpop.f32.mrb[3].mxu0  ;;  %v715_v25 = vld [vmem:[%s1353_s13 + $0x68] sm:$0xff]  ;;  %v717_v28 = vld [vmem:[%s1353_s13 + $0x78] sm:$0xff] }
  0xe2   :  { %v141_v59 = vadd.f32 %v140_v58, %v139_v57 }
  0xe3   :  { %v223_v20 = vpop.f32.mrb[0].mxu1 }
  0xe4   :  { %v224_v22 = vadd.f32 %v807_v18, %v223_v20  ;;  %v884_v23 = vpop.f32.mrb[1].mxu1  ;;  %v1030_v20 = vpack.c.bf16 %v711_v19, %v710_v17 }
  0xe6   :  { %v311_v24 = vmul.f32 %v224_v22, %v224_v22  ;;  %902 = vmatmul.mubr.msk.f32.vlgmr.msra.gmra.mrb[4].mxu0 %vm313_vm3, %v224_v22  ;;  %v713_v22 = vld [vmem:[%s1353_s13 + $0x58] sm:$0xff] }
  0xe7   :  { %910 = vmatpush3.msra.mxu0 %v388_v16  ;;  %911 = vmatprep.mubr.msk.f32.mxu0 %vm1047_vm0, %v1048_v3  ;;  %v1033_v23 = vpack.c.bf16 %v713_v22, %v712_v21 }
  0xe8   :  { %897 = vmatmul.mubr.msk.f32.vlgmr.msra.gmra.mrb[2].mxu1 %vm313_vm3, %v311_v24  ;;  %1017 = vmatprep.subr.bf16.mxu0 %v1046_v0  ;;  %v714_v24 = vld [vmem:[%s1353_s13 + $0x60] sm:$0xff] }
  0xe9   :  { %905 = vmatpush3.msra.mxu1 %v388_v16  ;;  %906 = vmatprep.mubr.msk.f32.mxu1 %vm1047_vm0, %v1048_v3  ;;  %v709_v16 = vld [vmem:[%s1353_s13 + $0x38] sm:$0xff]  ;;  %v1036_v26 = vpack.c.bf16 %v715_v25, %v714_v24 }
  0xea   :  { %993 = vmatprep.subr.bf16.mxu1 %v1046_v0 }
  0xec   :  { %907 = vmatmul.mubr.msk.f32.vlgmr.msra.gmra.mrb[4].mxu1 %vm313_vm3, %v308_v29  ;;  %v1039_v29 = vpack.c.bf16 %v717_v28, %v716_v27 }
  0xed   :  { %995 = vmatpush3.bf16.msra.mxu1 %v994_v30  ;;  %946 = vmatprep.mubr.msk.f32.mxu1 %vm1047_vm0, %v1048_v3 }
  0xee   :  { %996 = vmatprep.subr.bf16.mxu1 %v1046_v0 }
  0xf1   :  { %998 = vmatpush3.bf16.msra.mxu1 %v997_v34 }
  0xf2   :  { %999 = vmatprep.subr.bf16.mxu1 %v1046_v0 }
  0xf5   :  { %1001 = vmatpush3.bf16.msra.mxu1 %v1000_v37 }
  0xf6   :  { %1002 = vmatprep.subr.bf16.mxu1 %v1046_v0 }
  0xf9   :  { %1004 = vmatpush3.bf16.msra.mxu1 %v1003_v40 }
  0xfa   :  { %1005 = vmatprep.subr.bf16.mxu1 %v1046_v0 }
  0xfd   :  { %1007 = vmatpush3.bf16.msra.mxu1 %v1006_v43 }
  0xfe   :  { %1008 = vmatprep.subr.bf16.mxu1 %v1046_v0 }
 0x101   :  { %1010 = vmatpush3.bf16.msra.mxu1 %v1009_v46 }
 0x102   :  { %1011 = vmatprep.subr.bf16.mxu1 %v1046_v0 }
 0x105   :  { %1013 = vmatpush3.bf16.msra.mxu1 %v1012_v49 }
 0x106   :  { %1014 = vmatprep.subr.bf16.mxu1 %v1046_v0 }
 0x109   :  { %1016 = vmatpush3.bf16.msra.mxu1 %v1015_v52 }
 0x1b9   :  { %v458_v60 = vpop.f32.mrb[4].mxu0 }
 0x1ba   :  { %v608_v61 = vmul.f32 %v458_v60, %v141_v59  ;;  %v903_v62 = vpop.f32.mrb[5].mxu0 }
 0x1bb   :  { %v383_v63 = vpop.f32.mrb[2].mxu1 }
 0x1bc   :  { %v384_v1 = vadd.f32 1e-08, %v383_v63  ;;  %v898_v2 = vpop.f32.mrb[3].mxu1  ;;  %947 = vmatmul.mubr.f32.vlgmr.msra.gmra.mrb[6].mxu1 %v608_v61 }
 0x1be   :  { %1044 = vrsqrt.f32 %v384_v1 }
 0x1bf   :  { %v531_v4 = vpop.f32.mrb[4].mxu1 }
 0x1c0   :  { %v908_v5 = vpop.f32.mrb[5].mxu1 }
 0x1c8   :  { %v1045_v11 = vpop.eup %1044 }
 0x1c9   :  { %912 = vmatmul.mubr.msk.f32.vlgmr.msra.gmra.mrb[6].mxu0 %vm313_vm3, %v1045_v11 }
 0x1ca   :  { %1019 = vmatpush3.bf16.msra.mxu0 %v1018_v8  ;;  %981 = vmatprep.mubr.msk.f32.mxu0 %vm1047_vm0, %v1048_v3  ;;  %v708_v3 = vld [vmem:[%s1353_s13 + $0x30] sm:$0xff] }
 0x1cb   :  { %1020 = vmatprep.subr.bf16.mxu0 %v1046_v0  ;;  %v1027_v18 = vpack.c.bf16 %v709_v16, %v708_v3 }
 0x1ce   :  { %1022 = vmatpush3.bf16.msra.mxu0 %v1021_v12 }
 0x1cf   :  { %1023 = vmatprep.subr.bf16.mxu0 %v1046_v0 }
 0x1d2   :  { %1025 = vmatpush3.bf16.msra.mxu0 %v1024_v15 }
 0x1d3   :  { %1026 = vmatprep.subr.bf16.mxu0 %v1046_v0 }
 0x1d6   :  { %1028 = vmatpush3.bf16.msra.mxu0 %v1027_v18 }
 0x1d7   :  { %1029 = vmatprep.subr.bf16.mxu0 %v1046_v0 }
 0x1da   :  { %1031 = vmatpush3.bf16.msra.mxu0 %v1030_v20 }
 0x1db   :  { %1032 = vmatprep.subr.bf16.mxu0 %v1046_v0 }
 0x1de   :  { %1034 = vmatpush3.bf16.msra.mxu0 %v1033_v23 }
 0x1df   :  { %1035 = vmatprep.subr.bf16.mxu0 %v1046_v0 }
 0x1e2   :  { %1037 = vmatpush3.bf16.msra.mxu0 %v1036_v26 }
 0x1e3   :  { %1038 = vmatprep.subr.bf16.mxu0 %v1046_v0 }
 0x1e6   :  { %1040 = vmatpush3.bf16.msra.mxu0 %v1039_v29 }
 0x28f   :  { %v691_v30 = vpop.f32.mrb[6].mxu1 }
 0x290   :  { %v948_v31 = vpop.f32.mrb[7].mxu1 }
 0x29c   :  { %v604_v32 = vpop.f32.mrb[6].mxu0 }
 0x29d   :  { %v695_v33 = vmul.f32 %v691_v30, %v604_v32  ;;  %v913_v34 = vpop.f32.mrb[7].mxu0 }
 0x29f   :  { %vm696_vm5 = vcmp.ge.f32.partialorder %v695_v33, 0.0  ;;  %v697_v35 = vmul.f32 0.2, %v695_v33 }
 0x2a1   :  { %v698_v36 = vsel %vm696_vm5, %v695_v33, %v697_v35 }
 0x2a2   :  { %v699_v37 = vmul.f32 1.4142135, %v698_v36 }
 0x2a4   :  { %700 = vst [vmem:[%s1354_s15] sm:$0x3] %v699_v37  ;;  %v701_v0 = vmul.f32 %v699_v37, %v531_v4 }
 0x2a6   :  { %982 = vmatmul.mubr.f32.vlgmr.msra.gmra.mrb[8].mxu0 %v701_v0 }
 0x379   :  { %v791_v39 = vpop.f32.mrb[8].mxu0 }
 0x37a   :  { %v792_v40 = vadd.f32 %v815_v38, %v791_v39  ;;  %v983_v41 = vpop.f32.mrb[9].mxu0 }
 0x37c   :  { %796 = vst.msk [vmem:[%s1356_s16] sm:$0x3] %vm795_vm6, %v792_v40 }

</bundles_post_ra>
